<compile_context>
chip_gen: v5e
topology: v5e:2x2
jax: 0.10.0
libtpu: 0.0.40
codegen_flags: <defaults>
</compile_context>

<pallas_src>
import math
import functools

import jax
import jax.numpy as jnp
from jax.experimental import pallas as pl
from jax.experimental.pallas import tpu as pltpu


def _pick_tile(dim, target, align):
    """Largest tile <= target that divides `dim` and is a multiple of `align`
    (8 for sublane axes, 128 for lane axes). Falls back to the full dim when no
    aligned divisor exists (keeps correctness; may use a single large block).
    # TODO(synk): edge padding/masking for non-divisible awkward dims."""
    if dim <= target:
        return dim
    t = (target // align) * align
    while t >= align:
        if dim % t == 0:
            return t
        t -= align
    return dim


# ----------------------------------------------------------------------------
# Kernel 1: tiled dense linear  y = x @ w_t + b
#   x: (M, Din), w_t: (Din, Dout)  [weight already transposed], b: (Dout,)
#   grid = (M/tm, Dout/tn, Din/tk), f32 accumulator in VMEM scratch,
#   bf16 MXU operands (MXU is bf16-native on v5e/v6e/v7x).
# ----------------------------------------------------------------------------
def _linear_kernel(x_ref, w_ref, b_ref, o_ref, acc_ref):
    k = pl.program_id(2)

    @pl.when(k == 0)
    def _init():
        acc_ref[...] = jnp.zeros_like(acc_ref)

    acc_ref[...] += jnp.dot(x_ref[...].astype(jnp.bfloat16),
                            w_ref[...].astype(jnp.bfloat16),
                            preferred_element_type=jnp.float32)

    @pl.when(k == pl.num_programs(2) - 1)
    def _finalize():
        o_ref[...] = (acc_ref[...] + b_ref[...].astype(jnp.float32)).astype(o_ref.dtype)


def linear(x, w_t, b, *, block_m=256, block_n=256, block_k=1024):
    m, din = x.shape
    dout = w_t.shape[1]
    tm = _pick_tile(m, block_m, 8)       # sublane axis of x / out
    tn = _pick_tile(dout, block_n, 128)  # lane axis of w / bias / out
    tk = _pick_tile(din, block_k, 128)   # lane axis of x, sublane axis of w
    grid = (m // tm, dout // tn, din // tk)
    # x tiles re-read once per output-column block, w tiles once per output-row block.
    bytes_accessed = int(x.nbytes * (dout // tn) + w_t.nbytes * (m // tm)
                         + b.nbytes + m * dout * x.dtype.itemsize)
    return pl.pallas_call(
        _linear_kernel,
        out_shape=jax.ShapeDtypeStruct((m, dout), x.dtype),
        grid=grid,
        in_specs=[
            pl.BlockSpec((tm, tk), lambda i, j, k: (i, k)),
            pl.BlockSpec((tk, tn), lambda i, j, k: (k, j)),
            pl.BlockSpec((1, tn), lambda i, j, k: (0, j)),
        ],
        out_specs=pl.BlockSpec((tm, tn), lambda i, j, k: (i, j)),
        scratch_shapes=[pltpu.VMEM((tm, tn), jnp.float32)],
        compiler_params=pltpu.CompilerParams(
            dimension_semantics=("parallel", "parallel", "arbitrary")),
        cost_estimate=pl.CostEstimate(
            flops=2 * m * dout * din,
            transcendentals=0,
            bytes_accessed=bytes_accessed),
    )(x, w_t, b.reshape(1, dout))


# ----------------------------------------------------------------------------
# Kernel 2: flash-style attention, lane-dense (B, S, H*dk) in / out.
#   grid = (B, Sq/tq, Skv/tkv); online softmax.  Running stats are lane-packed:
#   m/l scratch are (tq, heads), the output accumulator is a single (tq, H*dk)
#   f32 scratch updated full-width each KV step; finalize is ONE full-width store.
#   1/sqrt(d_k) is already folded into the q projection weights.
# ----------------------------------------------------------------------------
def _flash_attn_kernel(q_ref, k_ref, v_ref, o_ref, m_sc, l_sc, acc_sc, *, heads, d_k):
    ki = pl.program_id(2)
    tq = acc_sc.shape[0]

    @pl.when(ki == 0)
    def _init():
        m_sc[...] = jnp.full_like(m_sc, -jnp.inf)
        l_sc[...] = jnp.zeros_like(l_sc)
        acc_sc[...] = jnp.zeros_like(acc_sc)

    q = q_ref[0]      # (tq, D)   -- q already scaled by 1/sqrt(d_k)
    k = k_ref[0]      # (tkv, D)
    v = v_ref[0]      # (tkv, D)
    m_prev = m_sc[...]  # (tq, heads)
    l_prev = l_sc[...]  # (tq, heads)

    # Heads live in contiguous d_k-wide lane chunks (matches torch .view(b,-1,h,d_k)).
    # TODO(synk): when d_k % 128 != 0 these slices are not lane-aligned; a head-major
    # projection layout / head grid axis would remove the cross-lane shuffles.
    m_cols, l_cols, pv_cols = [], [], []
    for h in range(heads):
        lo, hi = h * d_k, (h + 1) * d_k
        qh = q[:, lo:hi].astype(jnp.bfloat16)
        kh = k[:, lo:hi].astype(jnp.bfloat16)
        # scores: contract on d_k for both operands — no k transpose materialized.
        s = jax.lax.dot_general(qh, kh, (((1,), (1,)), ((), ())),
                                preferred_element_type=jnp.float32)   # (tq, tkv) f32
        m_h = jnp.maximum(m_prev[:, h:h + 1], jnp.max(s, axis=-1, keepdims=True))
        p = jnp.exp(s - m_h)                                          # (tq, tkv) f32 (EUP)
        l_h = jnp.sum(p, axis=-1, keepdims=True)
        pv = jnp.dot(p.astype(jnp.bfloat16), v[:, lo:hi].astype(jnp.bfloat16),
                     preferred_element_type=jnp.float32)              # (tq, d_k) f32
        m_cols.append(m_h)
        l_cols.append(l_h)
        pv_cols.append(pv)

    m_new = jnp.concatenate(m_cols, axis=1)             # (tq, heads)
    alpha = jnp.exp(m_prev - m_new)                     # (tq, heads)
    l_sc[...] = alpha * l_prev + jnp.concatenate(l_cols, axis=1)
    m_sc[...] = m_new

    # Full-width (lane-dense) accumulator update.
    alpha_wide = jnp.concatenate(
        [jnp.broadcast_to(alpha[:, h:h + 1], (tq, d_k)) for h in range(heads)], axis=1)
    acc_sc[...] = alpha_wide * acc_sc[...] + jnp.concatenate(pv_cols, axis=1)

    @pl.when(ki == pl.num_programs(2) - 1)
    def _finalize():
        inv_l = pl.reciprocal(l_sc[...], approx=True)   # (tq, heads), EUP reciprocal
        inv_wide = jnp.concatenate(
            [jnp.broadcast_to(inv_l[:, h:h + 1], (tq, d_k)) for h in range(heads)], axis=1)
        # ONE lane-dense full-width store (no per-head masked stores).
        o_ref[0] = (acc_sc[...] * inv_wide).astype(o_ref.dtype)


def _flash_pallas_call(heads, d_k, B, Sq, Skv, D, tq, tkv, dtype,
                       in_specs, operands, bytes_accessed):
    kernel = functools.partial(_flash_attn_kernel, heads=heads, d_k=d_k)
    return pl.pallas_call(
        kernel,
        out_shape=jax.ShapeDtypeStruct((B, Sq, D), dtype),
        grid=(B, Sq // tq, Skv // tkv),
        in_specs=in_specs,
        out_specs=pl.BlockSpec((1, tq, D), lambda b, qi, ki: (b, qi, 0)),
        scratch_shapes=[
            pltpu.VMEM((tq, heads), jnp.float32),   # running max m (heads lane-packed)
            pltpu.VMEM((tq, heads), jnp.float32),   # running denom l
            pltpu.VMEM((tq, D), jnp.float32),       # lane-dense running output acc
        ],
        compiler_params=pltpu.CompilerParams(
            dimension_semantics=("parallel", "parallel", "arbitrary")),
        cost_estimate=pl.CostEstimate(
            flops=4 * B * heads * Sq * Skv * d_k,
            transcendentals=B * heads * Sq * Skv,
            bytes_accessed=bytes_accessed),
    )(*operands)


def flash_attention(qp, kp, vp, *, heads, block_q=128, block_kv=128):
    """qp/kp/vp: (B, S, H*dk) projected activations (q already scaled) -> (B, Sq, H*dk)."""
    B, Sq, D = qp.shape
    Skv = kp.shape[1]
    d_k = D // heads
    tq = _pick_tile(Sq, block_q, 8)
    tkv = _pick_tile(Skv, block_kv, 8)
    n_q_tiles = Sq // tq
    # q read once (resident across the KV axis); k/v re-read once per q tile; output written once.
    bytes_accessed = int(qp.nbytes + (kp.nbytes + vp.nbytes) * n_q_tiles + qp.nbytes)
    in_specs = [
        pl.BlockSpec((1, tq, D), lambda b, qi, ki: (b, qi, 0)),
        pl.BlockSpec((1, tkv, D), lambda b, qi, ki: (b, ki, 0)),
        pl.BlockSpec((1, tkv, D), lambda b, qi, ki: (b, ki, 0)),
    ]
    return _flash_pallas_call(heads, d_k, B, Sq, Skv, D, tq, tkv, qp.dtype,
                              in_specs, (qp, kp, vp), bytes_accessed)


def flash_attention_packed(qkv, *, heads, block_q=128, block_kv=128):
    """qkv: (B, S, 3*D) packed [q|k|v] projection output (q slice already scaled).

    q/k/v are expressed as last-axis BLOCK offsets 0/1/2 of the SAME array, so the
    wrapper never does an HBM-level split.  Requires D % 128 == 0 (lane-aligned blocks).
    """
    B, S, threeD = qkv.shape
    D = threeD // 3
    assert D % 128 == 0
    d_k = D // heads
    tq = _pick_tile(S, block_q, 8)
    tkv = _pick_tile(S, block_kv, 8)
    comp_bytes = B * S * D * qkv.dtype.itemsize
    n_q_tiles = S // tq
    bytes_accessed = int(comp_bytes + 2 * comp_bytes * n_q_tiles + comp_bytes)
    in_specs = [
        pl.BlockSpec((1, tq, D), lambda b, qi, ki: (b, qi, 0)),   # q: last-axis block 0
        pl.BlockSpec((1, tkv, D), lambda b, qi, ki: (b, ki, 1)),  # k: last-axis block 1
        pl.BlockSpec((1, tkv, D), lambda b, qi, ki: (b, ki, 2)),  # v: last-axis block 2
    ]
    return _flash_pallas_call(heads, d_k, B, S, S, D, tq, tkv, qkv.dtype,
                              in_specs, (qkv, qkv, qkv), bytes_accessed)


# ----------------------------------------------------------------------------
# Module wrapper
# ----------------------------------------------------------------------------
class AttentionLayerPallas:
    def __init__(self, d_model, heads, key, dropout=0.1):
        assert d_model % heads == 0, "d_model is not divisable by heads"
        self.d_model = d_model
        self.heads = heads
        self.d_k = d_model // heads
        # TODO(synk): dropout on attention weights not applied (eval-mode identity).

        # PyTorch-Linear-style init: U(-1/sqrt(fan_in), 1/sqrt(fan_in)).
        # Weights stored PRE-TRANSPOSED as (Din, Dout) so the kernels never transpose.
        bound = 1.0 / math.sqrt(d_model)
        keys = jax.random.split(key, 8)

        def mk(kw, kb):
            w_t = jax.random.uniform(kw, (d_model, d_model), jnp.float32, -bound, bound)
            b = jax.random.uniform(kb, (d_model,), jnp.float32, -bound, bound)
            return w_t, b

        self.wq_t, self.bq = mk(keys[0], keys[1])
        self.wk_t, self.bk = mk(keys[2], keys[3])
        self.wv_t, self.bv = mk(keys[4], keys[5])
        self.wo_t, self.bo = mk(keys[6], keys[7])

        # 1/sqrt(d_k) softmax scale folded into the q projection (free at init; removes a
        # per-KV-step VPU multiply from the attention kernel).
        scale = 1.0 / math.sqrt(self.d_k)
        self.wq_scaled_t = self.wq_t * scale
        self.bq_scaled = self.bq * scale

        # Fused QKV weights for the self-attention fast path (one x load, 3x fewer act reads).
        self.w_qkv_t = jnp.concatenate(
            [self.wq_scaled_t, self.wk_t, self.wv_t], axis=1)             # (D, 3D)
        self.b_qkv = jnp.concatenate([self.bq_scaled, self.bk, self.bv])  # (3D,)

    def __call__(self, q, k, v, mask=None):
        assert mask is None  # TODO(synk): masked_fill path not implemented
        B, Sq, D = q.shape
        Sk = k.shape[1]

        if (q is k) and (k is v):
            # Self-attention: single fused projection — one pass over x.
            qkv = linear(q.reshape(B * Sq, D), self.w_qkv_t, self.b_qkv)   # (B*Sq, 3D)
            if D % 128 == 0:
                # No HBM-level QKV split: flash kernel indexes q/k/v as last-axis blocks.
                attn = flash_attention_packed(qkv.reshape(B, Sq, 3 * D), heads=self.heads)
            else:
                # Lane blocks of width D would be unaligned; fall back to an XLA split.
                qp = qkv[:, :D].reshape(B, Sq, D)
                kp = qkv[:, D:2 * D].reshape(B, Sq, D)
                vp = qkv[:, 2 * D:].reshape(B, Sq, D)
                attn = flash_attention(qp, kp, vp, heads=self.heads)
        else:
            qp = linear(q.reshape(B * Sq, D), self.wq_scaled_t, self.bq_scaled).reshape(B, Sq, D)
            kp = linear(k.reshape(B * Sk, D), self.wk_t, self.bk).reshape(B, Sk, D)
            vp = linear(v.reshape(B * Sk, D), self.wv_t, self.bv).reshape(B, Sk, D)
            attn = flash_attention(qp, kp, vp, heads=self.heads)

        out = linear(attn.reshape(B * Sq, D), self.wo_t, self.bo).reshape(B, Sq, D)
        return out


# ----------------------------------------------------------------------------
# References (plain JAX, f32) for sanity checks
# ----------------------------------------------------------------------------
def reference_forward(layer, q, k, v):
    B, Sq, D = q.shape
    H, dk = layer.heads, layer.d_k
    qp = (q @ layer.wq_t + layer.bq).reshape(B, -1, H, dk)
    kp = (k @ layer.wk_t + layer.bk).reshape(B, -1, H, dk)
    vp = (v @ layer.wv_t + layer.bv).reshape(B, -1, H, dk)
    score = jnp.einsum('bphd,bqhd->bhpq', qp, kp) / math.sqrt(dk)
    score = jax.nn.softmax(score, axis=-1)
    attn = jnp.einsum('bhpq,bqhd->bhpd', score, vp)
    attn = jnp.transpose(attn, (0, 2, 1, 3)).reshape(B, Sq, D)
    return attn @ layer.wo_t + layer.bo


def reference_attention(qp, kp, vp, heads):
    # NOTE: expects q already scaled by 1/sqrt(d_k) (same contract as flash_attention).
    B, S, D = qp.shape
    dk = D // heads
    q4 = qp.reshape(B, S, heads, dk)
    k4 = kp.reshape(B, -1, heads, dk)
    v4 = vp.reshape(B, -1, heads, dk)
    s = jnp.einsum('bphd,bqhd->bhpq', q4, k4)
    p = jax.nn.softmax(s, axis=-1)
    a = jnp.einsum('bhpq,bqhd->bphd', p, v4)
    return a.reshape(B, S, D)


if __name__ == "__main__":
    key = jax.random.PRNGKey(0)
    (k_param, k_param2, k_q, k_k, k_v, k_q2, k_k2, k_v2, k_x) = jax.random.split(key, 9)

    # bf16 MXU operands (f32 accumulation) -> compare against the f32 reference with
    # bf16-level tolerance.
    TOL = dict(atol=5e-2, rtol=5e-2)

    # ---- small config (d_model not a multiple of 128: packed path falls back) ----
    B, S, d_model, heads = 2, 8, 32, 4
    layer = AttentionLayerPallas(d_model, heads, k_param)

    q = jax.random.normal(k_q, (B, S, d_model), jnp.float32)
    k = jax.random.normal(k_k, (B, S, d_model), jnp.float32)
    v = jax.random.normal(k_v, (B, S, d_model), jnp.float32)

    # Cross-attention path (separate q/k/v projections).
    out = jax.block_until_ready(layer(q, k, v))
    ref = reference_forward(layer, q, k, v)
    assert out.shape == (B, S, d_model)
    assert jnp.allclose(out, ref, **TOL), "mismatch vs reference (cross-attn)"

    # Self-attention path exercises the fused QKV projection (split fallback, D % 128 != 0).
    out_sa = jax.block_until_ready(layer(q, q, q))
    ref_sa = reference_forward(layer, q, q, q)
    assert jnp.allclose(out_sa, ref_sa, **TOL), "mismatch vs reference (self-attn)"

    # ---- 128-wide config exercises the packed (no-HBM-split) flash path ----
    d_model2, heads2 = 128, 2
    layer2 = AttentionLayerPallas(d_model2, heads2, k_param2)
    x = jax.random.normal(k_x, (B, S, d_model2), jnp.float32)
    out_p = jax.block_until_ready(layer2(x, x, x))
    ref_p = reference_forward(layer2, x, x, x)
    assert jnp.allclose(out_p, ref_p, **TOL), "mismatch vs reference (packed self-attn)"

    # ---- multi-step online-softmax KV accumulation (2 q tiles x 2 kv tiles) ----
    S2 = 16
    d_k = d_model // heads
    qp = jax.random.normal(k_q2, (B, S2, d_model), jnp.float32) / math.sqrt(d_k)
    kp = jax.random.normal(k_k2, (B, S2, d_model), jnp.float32)
    vp = jax.random.normal(k_v2, (B, S2, d_model), jnp.float32)
    out2 = jax.block_until_ready(
        flash_attention(qp, kp, vp, heads=heads, block_q=8, block_kv=8))
    ref2 = reference_attention(qp, kp, vp, heads)
    assert jnp.allclose(out2, ref2, **TOL), "mismatch vs reference (flash tiling)"

    print("KERNEL_OK")
</pallas_src>

<mosaic_0001>
module attributes {stable_mosaic.version = 11 : i64} {
  func.func @_linear_kernel(%arg0: i32, %arg1: i32, %arg2: i32, %arg3: memref<16x32xf32, #tpu.memory_space<vmem>>, %arg4: memref<32x32xf32, #tpu.memory_space<vmem>>, %arg5: memref<1x32xf32, #tpu.memory_space<vmem>>, %arg6: memref<16x32xf32, #tpu.memory_space<vmem>>, %arg7: memref<16x32xf32, #tpu.memory_space<vmem>>) attributes {dimension_semantics = [#tpu.dimension_semantics<parallel>, #tpu.dimension_semantics<parallel>, #tpu.dimension_semantics<arbitrary>], iteration_bounds = array<i64: 1, 1, 1>, scalar_prefetch = 0 : i64, scratch_operands = 1 : i64, tpu.core_type = #tpu.core_type<tc>, window_params = [{transform_indices = @transform_0, window_bounds = array<i64: 16, 32>}, {transform_indices = @transform_1, window_bounds = array<i64: 32, 32>}, {transform_indices = @transform_2, window_bounds = array<i64: 1, 32>}, {transform_indices = @transform_3, window_bounds = array<i64: 16, 32>}]} {
    %c0_i32 = arith.constant 0 : i32
    %0 = arith.cmpi eq, %arg2, %c0_i32 : i32
    %1 = arith.extui %0 : i1 to i32
    %c0_i32_0 = arith.constant 0 : i32
    %2 = arith.cmpi ne, %1, %c0_i32_0 : i32
    scf.if %2 {
      %cst_10 = arith.constant 0.000000e+00 : f32
      %14 = vector.broadcast %cst_10 : f32 to vector<16x32xf32>
      %c0_11 = arith.constant 0 : index
      %c0_12 = arith.constant 0 : index
      %15 = vector.load %arg7[%c0_11, %c0_12] : memref<16x32xf32, #tpu.memory_space<vmem>>, vector<16x32xf32>
      tpu.vector_store %arg7[%c0_11, %c0_12], %14 {strides = array<i32>} : memref<16x32xf32, #tpu.memory_space<vmem>>, vector<16x32xf32>,
    } else {
    }
    %c0 = arith.constant 0 : index
    %c0_1 = arith.constant 0 : index
    %3 = vector.load %arg7[%c0, %c0_1] : memref<16x32xf32, #tpu.memory_space<vmem>>, vector<16x32xf32>
    %c0_2 = arith.constant 0 : index
    %c0_3 = arith.constant 0 : index
    %4 = vector.load %arg3[%c0_2, %c0_3] : memref<16x32xf32, #tpu.memory_space<vmem>>, vector<16x32xf32>
    %5 = arith.truncf %4 : vector<16x32xf32> to vector<16x32xbf16>
    %c0_4 = arith.constant 0 : index
    %c0_5 = arith.constant 0 : index
    %6 = vector.load %arg4[%c0_4, %c0_5] : memref<32x32xf32, #tpu.memory_space<vmem>>, vector<32x32xf32>
    %7 = arith.truncf %6 : vector<32x32xf32> to vector<32x32xbf16>
    %cst = arith.constant dense<0.000000e+00> : vector<16x32xf32>
    %8 = tpu.matmul %5, %7, %cst {dimension_numbers = #tpu.dot_dimension_numbers<[1], [0], [0], [1], [0, 0, 1, 1], [], []>} : vector<16x32xbf16>, vector<32x32xbf16>, vector<16x32xf32> -> vector<16x32xf32>
    %9 = arith.addf %3, %8 : vector<16x32xf32>
    %c0_6 = arith.constant 0 : index
    %c0_7 = arith.constant 0 : index
    %10 = vector.load %arg7[%c0_6, %c0_7] : memref<16x32xf32, #tpu.memory_space<vmem>>, vector<16x32xf32>
    tpu.vector_store %arg7[%c0_6, %c0_7], %9 {strides = array<i32>} : memref<16x32xf32, #tpu.memory_space<vmem>>, vector<16x32xf32>,
    %c0_i32_8 = arith.constant 0 : i32
    %11 = arith.cmpi eq, %arg2, %c0_i32_8 : i32
    %12 = arith.extui %11 : i1 to i32
    %c0_i32_9 = arith.constant 0 : i32
    %13 = arith.cmpi ne, %12, %c0_i32_9 : i32
    scf.if %13 {
      %c0_10 = arith.constant 0 : index
      %c0_11 = arith.constant 0 : index
      %14 = vector.load %arg7[%c0_10, %c0_11] : memref<16x32xf32, #tpu.memory_space<vmem>>, vector<16x32xf32>
      %c0_12 = arith.constant 0 : index
      %c0_13 = arith.constant 0 : index
      %15 = vector.load %arg5[%c0_12, %c0_13] : memref<1x32xf32, #tpu.memory_space<vmem>>, vector<1x32xf32>
      %16 = vector.broadcast %15 : vector<1x32xf32> to vector<16x32xf32>
      %17 = arith.addf %14, %16 : vector<16x32xf32>
      %c0_14 = arith.constant 0 : index
      %c0_15 = arith.constant 0 : index
      %18 = vector.load %arg6[%c0_14, %c0_15] : memref<16x32xf32, #tpu.memory_space<vmem>>, vector<16x32xf32>
      tpu.vector_store %arg6[%c0_14, %c0_15], %17 {strides = array<i32>} : memref<16x32xf32, #tpu.memory_space<vmem>>, vector<16x32xf32>,
    } else {
    }
    return
  }
  func.func @transform_0(%arg0: i32, %arg1: i32, %arg2: i32) -> (i32, i32) {
    %c0_i32 = arith.constant 0 : i32
    return %arg0, %arg2 : i32, i32
  }
  func.func @transform_1(%arg0: i32, %arg1: i32, %arg2: i32) -> (i32, i32) {
    %c0_i32 = arith.constant 0 : i32
    return %arg2, %arg1 : i32, i32
  }
  func.func @transform_2(%arg0: i32, %arg1: i32, %arg2: i32) -> (i32, i32) {
    %c0_i32 = arith.constant 0 : i32
    %c0_i32_0 = arith.constant 0 : i32
    return %c0_i32, %arg1 : i32, i32
  }
  func.func @transform_3(%arg0: i32, %arg1: i32, %arg2: i32) -> (i32, i32) {
    %c0_i32 = arith.constant 0 : i32
    return %arg0, %arg1 : i32, i32
  }
}

</mosaic_0001>

<bundles_post_ra>
// kernel: tpu_custom_call.1
= control target key start
LH: loop header
LB: loop body
LE: loop exit
PB: predicated region body
PF: predicated region fallthrough
CT: control target
= control target key end

     0   :  { %8 = vsyncpa [#allocation4], 0  ;;  %s261_s0 = inlined_call_operand.hbm [shape: f32[16,32], index: 0, kind: input, shape index: {}]   ;;  %s262_s1 = inlined_call_operand.hbm [shape: f32[32,32], index: 1, kind: input, shape index: {}]   ;;  %s263_s2 = inlined_call_operand.vmem [shape: f32[1,32], index: 2, kind: input, shape index: {}]   ;;  %s264_s3 = inlined_call_operand.hbm [shape: f32[16,32], index: 3, kind: output, shape index: {}]  }
   0x1   :  { %9 = vsyncpa [#allocation7], 0 }
   0x2   :  { %10 = vsyncpa [#allocation5], 0  ;;  %s15_s14 = sshll.u32 %s261_s0, 4  ;;  %s207_s15 = smov [#allocation3]   ;;  %s16_s14 = int_to_ptr.hbm [resolvable:$true] %s15_s14 }
   0x3   :  { %s17_s16 = sshll.u32 %s207_s15, 4  ;;  %s28_s19 = sshll.u32 %s262_s1, 4  ;;  %s18_s16 = int_to_ptr.vmem [resolvable:$true] %s17_s16  ;;  %s29_s19 = int_to_ptr.hbm [resolvable:$true] %s28_s19 }
   0x4   :  { %s208_s20 = smov 128   ;;  %s209_s21 = smov 8  }
   0x5   :  { %23 = dma.hbm_to_vmem [thread:$0]  %s16_s14, 256, %s18_s16, [#allocation4], %s208_s20, %s208_s20, %s209_s21  }
   0x6   :  { %s210_s22 = smov [#allocation6]  }
   0x7   :  { %s30_s23 = sshll.u32 %s210_s22, 4  ;;  %s31_s23 = int_to_ptr.vmem [resolvable:$true] %s30_s23 }
   0x8   :  { %36 = dma.hbm_to_vmem [thread:$0]  %s29_s19, 512, %s31_s23, [#allocation7], %s208_s20, %s208_s20, %s209_s21  }
   0x9   :  { %201 = dma.done.wait [#allocation4], 256  }
   0xa   :  { %202 = vsyncadd [#allocation4], 4294967040 }
   0xb   :  { %203 = dma.done.wait [#allocation7], 512  }
   0xc   :  { %204 = vsyncadd [#allocation7], 4294966784  ;;  %vm52_vm0 = vcmask 261120   ;;  %v211_v0 = vmov 0.0   ;;  %v62_v1 = vld [vmem:[#allocation6 + $0x10] sm:$0xff]  ;;  %v63_v2 = vld [vmem:[#allocation6 + $0x18] sm:$0xff] }
   0xd   :  { %53 = vst.msk [vmem:[#allocation2] sm:$0xff] %vm52_vm0, %v211_v0  ;;  %v60_v3 = vld [vmem:[#allocation6] sm:$0xff]  ;;  %v65_v4 = vpack.c.bf16 %v63_v2, %v62_v1  ;;  %v61_v5 = vld [vmem:[#allocation6 + $0x8] sm:$0xff]  ;;  %v57_v7 = vld [vmem:[#allocation3] sm:$0xff]  ;;  %s212_s24 = smov [#allocation8]   ;;  %s107_s28 = sshll.u32 %s264_s3, 4  ;;  %s108_s28 = int_to_ptr.hbm [resolvable:$true] %s107_s28 }
   0xe   :  { %54 = vst.msk [vmem:[#allocation2 + $0x8] sm:$0xff] %vm52_vm0, %v211_v0  ;;  %v64_v6 = vpack.c.bf16 %v61_v5, %v60_v3  ;;  %v58_v8 = vld [vmem:[#allocation3 + $0x8] sm:$0xff]  ;;  %v128_v14 = vld [vmem:[%s263_s2] ss:$0 sm:$0xff]  ;;  %s105_s25 = sshll.u32 %s212_s24, 4  ;;  %s106_s25 = int_to_ptr.vmem [resolvable:$true] %s105_s25 }
   0xf   :  { %76 = vmatpush.bf16.msra.mxu0 %v65_v4  ;;  %v59_v9 = vpack.c.bf16 %v58_v8, %v57_v7 }
  0x13   :  { %77 = vmatpush.bf16.msra.mxu0 %v64_v6 }
  0x14   :  { %v55_v10 = vld [vmem:[#allocation2] sm:$0xff] }
  0x15   :  { %v56_v13 = vld [vmem:[#allocation2 + $0x8] sm:$0xff] }
  0x16   :  { %121 = vmatmul.msk.bf16.vlgmr.msra.gmra.mxu0 %vm52_vm0, %v59_v9 }
  0x93   :  { %v79_v11 = vpop.f32.mrf.mxu0 }
  0x94   :  { %v84_v12 = vadd.f32 %v79_v11, %v55_v10 }
  0x96   :  { %86 = vst.msk [vmem:[#allocation2] sm:$0xff] %vm52_vm0, %v84_v12 }
  0x9b   :  { %v81_v15 = vpop.f32.mrf.mxu0 }
  0x9c   :  { %v85_v16 = vadd.f32 %v81_v15, %v56_v13 }
  0x9d   :  { %v91_v17 = vld [vmem:[#allocation2] sm:$0xff] }
  0x9e   :  { %87 = vst.msk [vmem:[#allocation2 + $0x8] sm:$0xff] %vm52_vm0, %v85_v16  ;;  %v97_v18 = vadd.f32 %v128_v14, %v91_v17 }
  0xa0   :  { %99 = vst.msk [vmem:[#allocation8] sm:$0xff] %vm52_vm0, %v97_v18 }
  0xa5   :  { %v92_v19 = vld [vmem:[#allocation2 + $0x8] sm:$0xff] }
  0xa6   :  { %v98_v20 = vadd.f32 %v128_v14, %v92_v19 }
  0xa8   :  { %100 = vst.msk [vmem:[#allocation8 + $0x8] sm:$0xff] %vm52_vm0, %v98_v20 }
  0xa9   :  { %113 = dma.vmem_to_hbm [thread:$0]  %s106_s25, 256, %s108_s28, [#allocation5], %s208_s20, %s208_s20, %s209_s21  }
  0xaa   :  { %205 = dma.done.wait [#allocation5], 256  }
  0xab   :  { %206 = vsyncadd [#allocation5], 4294967040 }
  0xac   :  { %118 = vsyncpa [#allocation4], 1 }
  0xad   :  { %119 = vsyncpa [#allocation7], 1 }
  0xae   :  { %120 = vsyncpa [#allocation5], 1 }

</bundles_post_ra>
